<compile_context>
chip_gen: v5e
topology: v5e:2x2
jax: 0.10.0
libtpu: 0.0.40
codegen_flags: <defaults>
</compile_context>

<pallas_src>
import jax
import jax.numpy as jnp
from jax.experimental import pallas as pl
from jax.experimental.pallas import tpu as pltpu


def _pick_block(dim, align, target):
    """Largest multiple of `align` that divides `dim` and is <= target, else dim."""
    best = None
    b = align
    cap = min(dim, target)
    while b <= cap:
        if dim % b == 0:
            best = b
        b += align
    return best if best is not None else dim


def _stats_kernel(x_ref, sum_ref, sq_ref):
    # x_ref: (Rb, Lb). sum_ref / sq_ref: (Rb, 1) f32 accumulators, resident
    # across the L (reduction) grid axis.
    @pl.when(pl.program_id(1) == 0)
    def _():
        sum_ref[...] = jnp.zeros_like(sum_ref)
        sq_ref[...] = jnp.zeros_like(sq_ref)

    x = x_ref[...].astype(jnp.float32)            # per-tile upcast
    sum_ref[...] += jnp.sum(x, axis=1, keepdims=True)
    sq_ref[...] += jnp.sum(x * x, axis=1, keepdims=True)


def _norm_kernel(x_ref, scale_ref, shift_ref, o_ref):
    # Folded affine: y = x * scale + shift (2 VALU ops per element).
    x = x_ref[...].astype(jnp.float32)
    o_ref[...] = (x * scale_ref[...] + shift_ref[...]).astype(o_ref.dtype)


def batchnorm2d_pallas(x_nchw, weight, bias, *, eps=1e-5,
                       row_block_target=256, lane_block_target=1024):
    """Training-mode BatchNorm2d forward on NCHW input via two Pallas passes."""
    N, C, H, W = x_nchw.shape
    R, L = N * C, H * W
    x2 = x_nchw.reshape(R, L)            # zero-copy: NCHW is row-major contiguous

    rb = _pick_block(R, 8, row_block_target)
    lb = _pick_block(L, 128, lane_block_target)
    grid = (R // rb, L // lb)

    # ---- Pass 1: per-row sum / sum-of-squares (tiled reduction) -------------
    row_sum, row_sq = pl.pallas_call(
        _stats_kernel,
        out_shape=(jax.ShapeDtypeStruct((R, 1), jnp.float32),
                   jax.ShapeDtypeStruct((R, 1), jnp.float32)),
        grid_spec=pl.GridSpec(
            grid=grid,
            in_specs=[pl.BlockSpec((rb, lb), lambda r, l: (r, l))],
            out_specs=(pl.BlockSpec((rb, 1), lambda r, l: (r, 0)),
                       pl.BlockSpec((rb, 1), lambda r, l: (r, 0))),
        ),
        compiler_params=pltpu.CompilerParams(
            dimension_semantics=("parallel", "arbitrary")),
    )(x2)

    # ---- Tiny O(C) glue: fold stats + affine into per-row scale / shift -----
    count = float(N * H * W)
    ch_sum = row_sum.reshape(N, C).sum(axis=0)
    ch_sq = row_sq.reshape(N, C).sum(axis=0)
    mean = ch_sum / count
    var = jnp.maximum(ch_sq / count - mean * mean, 0.0)   # biased var, f32
    inv_std = jax.lax.rsqrt(var + eps)
    scale_c = inv_std * weight.astype(jnp.float32)
    shift_c = bias.astype(jnp.float32) - mean * scale_c
    scale_r = jnp.tile(scale_c, N).reshape(R, 1)           # row r -> channel r % C
    shift_r = jnp.tile(shift_c, N).reshape(R, 1)

    # ---- Pass 2: streamed elementwise normalization --------------------------
    y2 = pl.pallas_call(
        _norm_kernel,
        out_shape=jax.ShapeDtypeStruct((R, L), x_nchw.dtype),
        grid_spec=pl.GridSpec(
            grid=grid,
            in_specs=[pl.BlockSpec((rb, lb), lambda r, l: (r, l)),
                      pl.BlockSpec((rb, 1), lambda r, l: (r, 0)),
                      pl.BlockSpec((rb, 1), lambda r, l: (r, 0))],
            out_specs=pl.BlockSpec((rb, lb), lambda r, l: (r, l)),
        ),
        compiler_params=pltpu.CompilerParams(
            dimension_semantics=("parallel", "parallel")),
    )(x2, scale_r, shift_r)

    return y2.reshape(N, C, H, W)        # zero-copy reshape back to NCHW


def make_domain_bn_params(key, num_features, sources):
    """Deterministic per-source affine parameters (stand-in for a checkpoint).

    PyTorch default init is weight=1, bias=0; small seeded perturbations make
    source selection observable.
    """
    params = {}
    for i, src in enumerate(sources):
        kw, kb = jax.random.split(jax.random.fold_in(key, i))
        params[src] = {
            "weight": 1.0 + 0.1 * jax.random.normal(kw, (num_features,), jnp.float32),
            "bias": 0.1 * jax.random.normal(kb, (num_features,), jnp.float32),
        }
    return params


def domain_batchnorm2d(x_nchw, params, this_source, *, eps=1e-5):
    """Forward of DomainBatchNorm2d: select BN by source name, then apply it."""
    p = params[this_source]
    return batchnorm2d_pallas(x_nchw, p["weight"], p["bias"], eps=eps)


def _reference(x_nchw, weight, bias, eps=1e-5):
    x = x_nchw.astype(jnp.float32)
    mean = jnp.mean(x, axis=(0, 2, 3), keepdims=True)
    var = jnp.mean((x - mean) ** 2, axis=(0, 2, 3), keepdims=True)
    w = weight.reshape(1, -1, 1, 1)
    b = bias.reshape(1, -1, 1, 1)
    return ((x - mean) / jnp.sqrt(var + eps) * w + b).astype(x_nchw.dtype)


if __name__ == "__main__":
    key = jax.random.PRNGKey(0)
    k_x, k_p = jax.random.split(key)

    N, C, H, W = 2, 4, 16, 16
    sources = ["SALICON", "DHF1K", "Hollywood", "UCFSports"]
    x = jax.random.normal(k_x, (N, C, H, W), jnp.float32)
    params = make_domain_bn_params(k_p, C, sources)

    this_source = "DHF1K"  # corresponds to self.this_source selection
    y = domain_batchnorm2d(x, params, this_source)
    y = jax.block_until_ready(y)

    y_ref = _reference(x, params[this_source]["weight"], params[this_source]["bias"])
    assert y.shape == x.shape and y.dtype == x.dtype
    assert jnp.allclose(y, y_ref, atol=1e-4, rtol=1e-4)

    print("KERNEL_OK")
</pallas_src>

<mosaic_0001>
module attributes {stable_mosaic.version = 11 : i64} {
  func.func @_stats_kernel(%arg0: i32, %arg1: i32, %arg2: memref<8x256xf32, #tpu.memory_space<vmem>>, %arg3: memref<8x1xf32, #tpu.memory_space<vmem>>, %arg4: memref<8x1xf32, #tpu.memory_space<vmem>>) attributes {dimension_semantics = [#tpu.dimension_semantics<parallel>, #tpu.dimension_semantics<arbitrary>], iteration_bounds = array<i64: 1, 1>, scalar_prefetch = 0 : i64, scratch_operands = 0 : i64, tpu.core_type = #tpu.core_type<tc>, window_params = [{transform_indices = @transform_0, window_bounds = array<i64: 8, 256>}, {transform_indices = @transform_1, window_bounds = array<i64: 8, 1>}, {transform_indices = @transform_2, window_bounds = array<i64: 8, 1>}]} {
    %c0_i32 = arith.constant 0 : i32
    %0 = arith.cmpi eq, %arg1, %c0_i32 : i32
    %1 = arith.extui %0 : i1 to i32
    %c0_i32_0 = arith.constant 0 : i32
    %2 = arith.cmpi ne, %1, %c0_i32_0 : i32
    scf.if %2 {
      %cst_11 = arith.constant 0.000000e+00 : f32
      %15 = vector.broadcast %cst_11 : f32 to vector<8x1xf32>
      %c0_12 = arith.constant 0 : index
      %c0_13 = arith.constant 0 : index
      %16 = vector.load %arg3[%c0_12, %c0_13] : memref<8x1xf32, #tpu.memory_space<vmem>>, vector<8x1xf32>
      tpu.vector_store %arg3[%c0_12, %c0_13], %15 {strides = array<i32>} : memref<8x1xf32, #tpu.memory_space<vmem>>, vector<8x1xf32>,
      %cst_14 = arith.constant 0.000000e+00 : f32
      %17 = vector.broadcast %cst_14 : f32 to vector<8x1xf32>
      %c0_15 = arith.constant 0 : index
      %c0_16 = arith.constant 0 : index
      %18 = vector.load %arg4[%c0_15, %c0_16] : memref<8x1xf32, #tpu.memory_space<vmem>>, vector<8x1xf32>
      tpu.vector_store %arg4[%c0_15, %c0_16], %17 {strides = array<i32>} : memref<8x1xf32, #tpu.memory_space<vmem>>, vector<8x1xf32>,
    } else {
    }
    %c0 = arith.constant 0 : index
    %c0_1 = arith.constant 0 : index
    %3 = vector.load %arg2[%c0, %c0_1] : memref<8x256xf32, #tpu.memory_space<vmem>>, vector<8x256xf32>
    %c0_2 = arith.constant 0 : index
    %c0_3 = arith.constant 0 : index
    %4 = vector.load %arg3[%c0_2, %c0_3] : memref<8x1xf32, #tpu.memory_space<vmem>>, vector<8x1xf32>
    %cst = arith.constant dense<0.000000e+00> : vector<8xf32>
    %5 = vector.multi_reduction <add>, %3, %cst [1] : vector<8x256xf32> to vector<8xf32>
    %6 = vector.shape_cast %5 : vector<8xf32> to vector<8x1xf32>
    %7 = arith.addf %4, %6 : vector<8x1xf32>
    %c0_4 = arith.constant 0 : index
    %c0_5 = arith.constant 0 : index
    %8 = vector.load %arg3[%c0_4, %c0_5] : memref<8x1xf32, #tpu.memory_space<vmem>>, vector<8x1xf32>
    tpu.vector_store %arg3[%c0_4, %c0_5], %7 {strides = array<i32>} : memref<8x1xf32, #tpu.memory_space<vmem>>, vector<8x1xf32>,
    %c0_6 = arith.constant 0 : index
    %c0_7 = arith.constant 0 : index
    %9 = vector.load %arg4[%c0_6, %c0_7] : memref<8x1xf32, #tpu.memory_space<vmem>>, vector<8x1xf32>
    %10 = arith.mulf %3, %3 : vector<8x256xf32>
    %cst_8 = arith.constant dense<0.000000e+00> : vector<8xf32>
    %11 = vector.multi_reduction <add>, %10, %cst_8 [1] : vector<8x256xf32> to vector<8xf32>
    %12 = vector.shape_cast %11 : vector<8xf32> to vector<8x1xf32>
    %13 = arith.addf %9, %12 : vector<8x1xf32>
    %c0_9 = arith.constant 0 : index
    %c0_10 = arith.constant 0 : index
    %14 = vector.load %arg4[%c0_9, %c0_10] : memref<8x1xf32, #tpu.memory_space<vmem>>, vector<8x1xf32>
    tpu.vector_store %arg4[%c0_9, %c0_10], %13 {strides = array<i32>} : memref<8x1xf32, #tpu.memory_space<vmem>>, vector<8x1xf32>,
    return
  }
  func.func @transform_0(%arg0: i32, %arg1: i32) -> (i32, i32) {
    %c0_i32 = arith.constant 0 : i32
    return %arg0, %arg1 : i32, i32
  }
  func.func @transform_1(%arg0: i32, %arg1: i32) -> (i32, i32) {
    %c0_i32 = arith.constant 0 : i32
    %c0_i32_0 = arith.constant 0 : i32
    return %arg0, %c0_i32 : i32, i32
  }
  func.func @transform_2(%arg0: i32, %arg1: i32) -> (i32, i32) {
    %c0_i32 = arith.constant 0 : i32
    %c0_i32_0 = arith.constant 0 : i32
    return %arg0, %c0_i32 : i32, i32
  }
}

</mosaic_0001>

<bundles_post_ra>
// kernel: tpu_custom_call.1
= control target key start
LH: loop header
LB: loop body
LE: loop exit
PB: predicated region body
PF: predicated region fallthrough
CT: control target
= control target key end

     0   :  { %8 = vsyncpa [#allocation3], 0  ;;  %s85_s12 = smov [#allocation2]   ;;  %s127_s0 = inlined_call_operand.hbm [shape: f32[8,256], index: 0, kind: input, shape index: {}]   ;;  %s128_s1 = inlined_call_operand.vmem [shape: f32[8,1], index: 1, kind: output, shape index: {0}]   ;;  %s129_s2 = inlined_call_operand.vmem [shape: f32[8,1], index: 2, kind: output, shape index: {1}]  }
   0x1   :  { %s14_s11 = sshll.u32 %s127_s0, 4  ;;  %s16_s13 = sshll.u32 %s85_s12, 4  ;;  %s15_s11 = int_to_ptr.hbm [resolvable:$true] %s14_s11  ;;  %s17_s13 = int_to_ptr.vmem [resolvable:$true] %s16_s13 }
   0x2   :  { %19 = dma.hbm_to_vmem [thread:$0]  %s15_s11, 256, %s17_s13, [#allocation3]  }
   0x3   :  { %83 = dma.done.wait [#allocation3], 256  }
   0x4   :  { %84 = vsyncadd [#allocation3], 4294967040  ;;  %vm28_vm0 = vcmask 7168   ;;  %v86_v0 = vmov 0.0   ;;  %v31_v1 = vld [vmem:[#allocation2] sm:$0xff]  ;;  %v32_v2 = vld [vmem:[#allocation2 + $0x8] sm:$0xff] }
   0x5   :  { %29 = vst.msk [vmem:[%s128_s1] sm:$0xff] %vm28_vm0, %v86_v0  ;;  %v34_v3 = vadd.f32 %v32_v2, %v31_v1  ;;  %v41_v4 = vmul.f32 %v31_v1, %v31_v1  ;;  %v42_v5 = vmul.f32 %v32_v2, %v32_v2 }
   0x6   :  { %30 = vst.msk [vmem:[%s129_s2] sm:$0xff] %vm28_vm0, %v86_v0 }
   0x7   :  { %35 = vadd.xlane.f32.xlu0 %v34_v3  ;;  %v43_v6 = vadd.f32 %v42_v5, %v41_v4 }
   0xc   :  { %v33_v7 = vld [vmem:[%s128_s1] sm:$0xff] }
   0xd   :  { %v40_v10 = vld [vmem:[%s129_s2] sm:$0xff] }
   0xf   :  { %44 = vadd.xlane.f32.xlu0 %v43_v6 }
  0x7a   :  { %v36_v8 = vpop.xlane.xlu0 %35 }
  0x7b   :  { %v37_v9 = vadd.f32 %v36_v8, %v33_v7 }
  0x7d   :  { %39 = vst.msk [vmem:[%s128_s1] sm:$0xff] %vm28_vm0, %v37_v9 }
  0x82   :  { %v45_v11 = vpop.xlane.xlu0 %44 }
  0x83   :  { %v46_v12 = vadd.f32 %v45_v11, %v40_v10 }
  0x85   :  { %47 = vst.msk [vmem:[%s129_s2] sm:$0xff] %vm28_vm0, %v46_v12 }
  0x86   :  { %56 = vsyncpa [#allocation3], 1 }

</bundles_post_ra>
